<compile_context>
chip_gen: v6e
topology: v6e:2x2x1
jax: 0.10.0
libtpu: 0.0.40
codegen_flags: <defaults>
</compile_context>

<pallas_src>
import functools

import jax
import jax.numpy as jnp
from jax.experimental import pallas as pl
from jax.experimental.pallas import tpu as pltpu


def _fused_forward_kernel(patches_ref, wmat_ref, convb_ref, fcw_ref, fcb_ref,
                          out_ref, *, n_batch, hw, cout):
    """Fused conv3x3(+bias+ReLU) -> flatten -> fc(+bias).

    patches_ref: [Cin*9, N*H*W]   bf16  (im2col, transposed / lane-dense)
    wmat_ref:    [Cout, Cin*9]    bf16  (conv weight, PyTorch flatten order)
    convb_ref:   [Cout, 1]        f32
    fcw_ref:     [Cout, H*W, 128] bf16  (fc weight, pre-permuted + padded)
    fcb_ref:     [1, 128]         f32   (fc bias, padded)
    out_ref:     [N, 128]         f32   (padded logits)
    """
    # ---- encoder: one MXU matmul, lane-dense [Cout, N*H*W] result ----
    conv = jnp.dot(wmat_ref[...], patches_ref[...],
                   preferred_element_type=jnp.float32)        # [Cout, N*HW] f32
    conv = jnp.maximum(conv + convb_ref[...], 0.0)            # bias + ReLU in f32
    conv_bf = conv.astype(jnp.bfloat16)

    # ---- fc: flatten is implicit.  For image n, the PyTorch flatten order
    # (c, h, w) is exactly row-major order of conv_bf[:, n*HW:(n+1)*HW], and the
    # fc weight was pre-permuted to [Cout, HW, 128], so the fc is just a sum of
    # per-channel [1, HW] @ [HW, 128] MXU matmuls with f32 accumulation. ----
    bias_row = fcb_ref[...]                                   # [1, 128] f32
    accs = [bias_row for _ in range(n_batch)]
    for c in range(cout):                                     # static unroll (8)
        w_c = fcw_ref[c]                                      # [HW, 128] bf16
        for n in range(n_batch):                              # static unroll (2)
            lhs = conv_bf[c:c + 1, n * hw:(n + 1) * hw]       # [1, HW] bf16
            accs[n] = accs[n] + jnp.dot(lhs, w_c,
                                        preferred_element_type=jnp.float32)
    out_ref[...] = jnp.concatenate(accs, axis=0)              # [N, 128] f32, lane-dense


def _model_forward(x, conv_w, conv_b, fc_w, fc_b):
    """Forward pass equivalent to ModelForSaliency(encoder, fc)(x).

    x:       [N, C_in, H, W]   (NCHW, float32)
    conv_w:  [C_out, C_in, 3, 3]
    conv_b:  [C_out]
    fc_w:    [num_classes, C_out*H*W]
    fc_b:    [num_classes]
    returns: [N, num_classes]
    """
    Nb, Cin, H, W = x.shape
    Cout = conv_w.shape[0]
    num_classes = fc_w.shape[0]
    HW = H * W
    M = Nb * HW
    LANES = 128
    ncls_pad = ((num_classes + LANES - 1) // LANES) * LANES   # 10 -> 128

    # ---- one-time trace-time weight prep (tiny, fused/folded by XLA) ----
    wmat = conv_w.reshape(Cout, Cin * 9).astype(jnp.bfloat16)           # [8, 36]
    convb2 = conv_b.reshape(Cout, 1).astype(jnp.float32)                # [8, 1]
    fc_w_pad = jnp.zeros((ncls_pad, Cout * HW),
                         jnp.float32).at[:num_classes].set(fc_w)        # [128, 2048]
    # fcw3[c, s, j] = fc_w[j, c*HW + s]  -> matches in-kernel activation layout
    fcw3 = (fc_w_pad.reshape(ncls_pad, Cout, HW)
            .transpose(1, 2, 0)
            .astype(jnp.bfloat16))                                      # [8, 256, 128]
    fcb2 = jnp.zeros((1, ncls_pad), jnp.float32).at[0, :num_classes].set(fc_b)

    # ---- im2col built directly in the transposed, lane-dense layout ----
    # patches_T[ci*9 + (dy*3+dx), n*HW + h*W + w] = x_pad[n, ci, h+dy, w+dx]
    xp = jnp.pad(x, ((0, 0), (0, 0), (1, 1), (1, 1)))
    taps = [xp[:, :, dy:dy + H, dx:dx + W] for dy in range(3) for dx in range(3)]
    patches_T = (jnp.stack(taps, axis=2)          # [N, Cin, 9, H, W]
                 .transpose(1, 2, 0, 3, 4)        # [Cin, 9, N, H, W]
                 .reshape(Cin * 9, M)
                 .astype(jnp.bfloat16))           # [36, 512]
    # TODO(synk): 3x3 patch extraction stays as trace-time XLA glue; moving it
    # in-kernel needs an (H,W)->H*W lane merge that Mosaic does not lower cleanly
    # at W=16, so we keep a single MXU-friendly im2col matmul instead.

    flops = 2 * Cout * (Cin * 9) * M + 2 * Nb * (Cout * HW) * ncls_pad
    bytes_accessed = (patches_T.size * 2 + wmat.size * 2 + convb2.size * 4 +
                      fcw3.size * 2 + fcb2.size * 4 + Nb * ncls_pad * 4)

    kernel = functools.partial(_fused_forward_kernel,
                               n_batch=Nb, hw=HW, cout=Cout)
    vmem_spec = pl.BlockSpec(memory_space=pltpu.MemorySpace.VMEM)
    out_pad = pl.pallas_call(
        kernel,
        out_shape=jax.ShapeDtypeStruct((Nb, ncls_pad), jnp.float32),
        in_specs=[vmem_spec] * 5,
        out_specs=vmem_spec,
        cost_estimate=pl.CostEstimate(flops=flops, transcendentals=0,
                                      bytes_accessed=bytes_accessed),
    )(patches_T, wmat, convb2, fcw3, fcb2)

    return out_pad[:, :num_classes]


model_for_saliency = jax.jit(_model_forward)


def _reference(x, conv_w, conv_b, fc_w, fc_b):
    """Pure-JAX f32 reference (matches the PyTorch module)."""
    y = jax.lax.conv_general_dilated(
        x, conv_w, window_strides=(1, 1), padding=((1, 1), (1, 1)),
        dimension_numbers=("NCHW", "OIHW", "NCHW"))
    y = jax.nn.relu(y + conv_b[None, :, None, None])
    flat = y.reshape(y.shape[0], -1)
    return flat @ fc_w.T + fc_b


if __name__ == "__main__":
    key = jax.random.PRNGKey(0)
    k1, k2, k3, k4, k5 = jax.random.split(key, 5)

    N, Cin, H, W = 2, 4, 16, 16
    Cout, num_classes = 8, 10

    x = jax.random.normal(k1, (N, Cin, H, W), dtype=jnp.float32)
    conv_w = 0.1 * jax.random.normal(k2, (Cout, Cin, 3, 3), dtype=jnp.float32)
    conv_b = 0.1 * jax.random.normal(k3, (Cout,), dtype=jnp.float32)
    fc_w = 0.05 * jax.random.normal(k4, (num_classes, Cout * H * W), dtype=jnp.float32)
    fc_b = 0.05 * jax.random.normal(k5, (num_classes,), dtype=jnp.float32)

    out = model_for_saliency(x, conv_w, conv_b, fc_w, fc_b)
    out = jax.block_until_ready(out)

    ref = _reference(x, conv_w, conv_b, fc_w, fc_b)
    assert out.shape == (N, num_classes)
    # bf16 MXU inputs with f32 accumulation -> loosened tolerance vs f32 reference.
    assert jnp.allclose(out, ref, atol=3e-2, rtol=3e-2), "mismatch vs reference"

    print("KERNEL_OK")
</pallas_src>

<mosaic_0001>
module attributes {stable_mosaic.version = 11 : i64} {
  func.func @_fused_forward_kernel(%arg0: memref<36x512xbf16, #tpu.memory_space<vmem>>, %arg1: memref<8x36xbf16, #tpu.memory_space<vmem>>, %arg2: memref<8x1xf32, #tpu.memory_space<vmem>>, %arg3: memref<8x256x128xbf16, #tpu.memory_space<vmem>>, %arg4: memref<1x128xf32, #tpu.memory_space<vmem>>, %arg5: memref<2x128xf32, #tpu.memory_space<vmem>>) attributes {dimension_semantics = [], scalar_prefetch = 0 : i64, scratch_operands = 0 : i64, tpu.core_type = #tpu.core_type<tc>} {
    %c0 = arith.constant 0 : index
    %c0_0 = arith.constant 0 : index
    %0 = vector.load %arg1[%c0, %c0_0] : memref<8x36xbf16, #tpu.memory_space<vmem>>, vector<8x36xbf16>
    %c0_1 = arith.constant 0 : index
    %c0_2 = arith.constant 0 : index
    %1 = vector.load %arg0[%c0_1, %c0_2] : memref<36x512xbf16, #tpu.memory_space<vmem>>, vector<36x512xbf16>
    %cst = arith.constant dense<0.000000e+00> : vector<8x512xf32>
    %2 = tpu.matmul %0, %1, %cst {dimension_numbers = #tpu.dot_dimension_numbers<[1], [0], [0], [1], [0, 0, 1, 1], [], []>} : vector<8x36xbf16>, vector<36x512xbf16>, vector<8x512xf32> -> vector<8x512xf32>
    %c0_3 = arith.constant 0 : index
    %c0_4 = arith.constant 0 : index
    %3 = vector.load %arg2[%c0_3, %c0_4] : memref<8x1xf32, #tpu.memory_space<vmem>>, vector<8x1xf32>
    %4 = vector.broadcast %3 : vector<8x1xf32> to vector<8x512xf32>
    %5 = arith.addf %2, %4 : vector<8x512xf32>
    %cst_5 = arith.constant 0.000000e+00 : f32
    %6 = vector.broadcast %cst_5 : f32 to vector<8x512xf32>
    %7 = arith.maximumf %5, %6 : vector<8x512xf32>
    %8 = arith.truncf %7 : vector<8x512xf32> to vector<8x512xbf16>
    %c0_6 = arith.constant 0 : index
    %c0_7 = arith.constant 0 : index
    %9 = vector.load %arg4[%c0_6, %c0_7] : memref<1x128xf32, #tpu.memory_space<vmem>>, vector<1x128xf32>
    %c0_8 = arith.constant 0 : index
    %c0_9 = arith.constant 0 : index
    %c0_10 = arith.constant 0 : index
    %10 = vector.load %arg3[%c0_8, %c0_9, %c0_10] : memref<8x256x128xbf16, #tpu.memory_space<vmem>>, vector<1x256x128xbf16>
    %11 = vector.shape_cast %10 : vector<1x256x128xbf16> to vector<256x128xbf16>
    %12 = vector.extract_strided_slice %8 {offsets = [0, 0], sizes = [1, 256], strides = [1, 1]} : vector<8x512xbf16> to vector<1x256xbf16>
    %cst_11 = arith.constant dense<0.000000e+00> : vector<1x128xf32>
    %13 = tpu.matmul %12, %11, %cst_11 {dimension_numbers = #tpu.dot_dimension_numbers<[1], [0], [0], [1], [0, 0, 1, 1], [], []>} : vector<1x256xbf16>, vector<256x128xbf16>, vector<1x128xf32> -> vector<1x128xf32>
    %14 = arith.addf %9, %13 : vector<1x128xf32>
    %15 = vector.extract_strided_slice %8 {offsets = [0, 256], sizes = [1, 256], strides = [1, 1]} : vector<8x512xbf16> to vector<1x256xbf16>
    %cst_12 = arith.constant dense<0.000000e+00> : vector<1x128xf32>
    %16 = tpu.matmul %15, %11, %cst_12 {dimension_numbers = #tpu.dot_dimension_numbers<[1], [0], [0], [1], [0, 0, 1, 1], [], []>} : vector<1x256xbf16>, vector<256x128xbf16>, vector<1x128xf32> -> vector<1x128xf32>
    %17 = arith.addf %9, %16 : vector<1x128xf32>
    %c1 = arith.constant 1 : index
    %c0_13 = arith.constant 0 : index
    %c0_14 = arith.constant 0 : index
    %18 = vector.load %arg3[%c1, %c0_13, %c0_14] : memref<8x256x128xbf16, #tpu.memory_space<vmem>>, vector<1x256x128xbf16>
    %19 = vector.shape_cast %18 : vector<1x256x128xbf16> to vector<256x128xbf16>
    %20 = vector.extract_strided_slice %8 {offsets = [1, 0], sizes = [1, 256], strides = [1, 1]} : vector<8x512xbf16> to vector<1x256xbf16>
    %cst_15 = arith.constant dense<0.000000e+00> : vector<1x128xf32>
    %21 = tpu.matmul %20, %19, %cst_15 {dimension_numbers = #tpu.dot_dimension_numbers<[1], [0], [0], [1], [0, 0, 1, 1], [], []>} : vector<1x256xbf16>, vector<256x128xbf16>, vector<1x128xf32> -> vector<1x128xf32>
    %22 = arith.addf %14, %21 : vector<1x128xf32>
    %23 = vector.extract_strided_slice %8 {offsets = [1, 256], sizes = [1, 256], strides = [1, 1]} : vector<8x512xbf16> to vector<1x256xbf16>
    %cst_16 = arith.constant dense<0.000000e+00> : vector<1x128xf32>
    %24 = tpu.matmul %23, %19, %cst_16 {dimension_numbers = #tpu.dot_dimension_numbers<[1], [0], [0], [1], [0, 0, 1, 1], [], []>} : vector<1x256xbf16>, vector<256x128xbf16>, vector<1x128xf32> -> vector<1x128xf32>
    %25 = arith.addf %17, %24 : vector<1x128xf32>
    %c2 = arith.constant 2 : index
    %c0_17 = arith.constant 0 : index
    %c0_18 = arith.constant 0 : index
    %26 = vector.load %arg3[%c2, %c0_17, %c0_18] : memref<8x256x128xbf16, #tpu.memory_space<vmem>>, vector<1x256x128xbf16>
    %27 = vector.shape_cast %26 : vector<1x256x128xbf16> to vector<256x128xbf16>
    %28 = vector.extract_strided_slice %8 {offsets = [2, 0], sizes = [1, 256], strides = [1, 1]} : vector<8x512xbf16> to vector<1x256xbf16>
    %cst_19 = arith.constant dense<0.000000e+00> : vector<1x128xf32>
    %29 = tpu.matmul %28, %27, %cst_19 {dimension_numbers = #tpu.dot_dimension_numbers<[1], [0], [0], [1], [0, 0, 1, 1], [], []>} : vector<1x256xbf16>, vector<256x128xbf16>, vector<1x128xf32> -> vector<1x128xf32>
    %30 = arith.addf %22, %29 : vector<1x128xf32>
    %31 = vector.extract_strided_slice %8 {offsets = [2, 256], sizes = [1, 256], strides = [1, 1]} : vector<8x512xbf16> to vector<1x256xbf16>
    %cst_20 = arith.constant dense<0.000000e+00> : vector<1x128xf32>
    %32 = tpu.matmul %31, %27, %cst_20 {dimension_numbers = #tpu.dot_dimension_numbers<[1], [0], [0], [1], [0, 0, 1, 1], [], []>} : vector<1x256xbf16>, vector<256x128xbf16>, vector<1x128xf32> -> vector<1x128xf32>
    %33 = arith.addf %25, %32 : vector<1x128xf32>
    %c3 = arith.constant 3 : index
    %c0_21 = arith.constant 0 : index
    %c0_22 = arith.constant 0 : index
    %34 = vector.load %arg3[%c3, %c0_21, %c0_22] : memref<8x256x128xbf16, #tpu.memory_space<vmem>>, vector<1x256x128xbf16>
    %35 = vector.shape_cast %34 : vector<1x256x128xbf16> to vector<256x128xbf16>
    %36 = vector.extract_strided_slice %8 {offsets = [3, 0], sizes = [1, 256], strides = [1, 1]} : vector<8x512xbf16> to vector<1x256xbf16>
    %cst_23 = arith.constant dense<0.000000e+00> : vector<1x128xf32>
    %37 = tpu.matmul %36, %35, %cst_23 {dimension_numbers = #tpu.dot_dimension_numbers<[1], [0], [0], [1], [0, 0, 1, 1], [], []>} : vector<1x256xbf16>, vector<256x128xbf16>, vector<1x128xf32> -> vector<1x128xf32>
    %38 = arith.addf %30, %37 : vector<1x128xf32>
    %39 = vector.extract_strided_slice %8 {offsets = [3, 256], sizes = [1, 256], strides = [1, 1]} : vector<8x512xbf16> to vector<1x256xbf16>
    %cst_24 = arith.constant dense<0.000000e+00> : vector<1x128xf32>
    %40 = tpu.matmul %39, %35, %cst_24 {dimension_numbers = #tpu.dot_dimension_numbers<[1], [0], [0], [1], [0, 0, 1, 1], [], []>} : vector<1x256xbf16>, vector<256x128xbf16>, vector<1x128xf32> -> vector<1x128xf32>
    %41 = arith.addf %33, %40 : vector<1x128xf32>
    %c4 = arith.constant 4 : index
    %c0_25 = arith.constant 0 : index
    %c0_26 = arith.constant 0 : index
    %42 = vector.load %arg3[%c4, %c0_25, %c0_26] : memref<8x256x128xbf16, #tpu.memory_space<vmem>>, vector<1x256x128xbf16>
    %43 = vector.shape_cast %42 : vector<1x256x128xbf16> to vector<256x128xbf16>
    %44 = vector.extract_strided_slice %8 {offsets = [4, 0], sizes = [1, 256], strides = [1, 1]} : vector<8x512xbf16> to vector<1x256xbf16>
    %cst_27 = arith.constant dense<0.000000e+00> : vector<1x128xf32>
    %45 = tpu.matmul %44, %43, %cst_27 {dimension_numbers = #tpu.dot_dimension_numbers<[1], [0], [0], [1], [0, 0, 1, 1], [], []>} : vector<1x256xbf16>, vector<256x128xbf16>, vector<1x128xf32> -> vector<1x128xf32>
    %46 = arith.addf %38, %45 : vector<1x128xf32>
    %47 = vector.extract_strided_slice %8 {offsets = [4, 256], sizes = [1, 256], strides = [1, 1]} : vector<8x512xbf16> to vector<1x256xbf16>
    %cst_28 = arith.constant dense<0.000000e+00> : vector<1x128xf32>
    %48 = tpu.matmul %47, %43, %cst_28 {dimension_numbers = #tpu.dot_dimension_numbers<[1], [0], [0], [1], [0, 0, 1, 1], [], []>} : vector<1x256xbf16>, vector<256x128xbf16>, vector<1x128xf32> -> vector<1x128xf32>
    %49 = arith.addf %41, %48 : vector<1x128xf32>
    %c5 = arith.constant 5 : index
    %c0_29 = arith.constant 0 : index
    %c0_30 = arith.constant 0 : index
    %50 = vector.load %arg3[%c5, %c0_29, %c0_30] : memref<8x256x128xbf16, #tpu.memory_space<vmem>>, vector<1x256x128xbf16>
    %51 = vector.shape_cast %50 : vector<1x256x128xbf16> to vector<256x128xbf16>
    %52 = vector.extract_strided_slice %8 {offsets = [5, 0], sizes = [1, 256], strides = [1, 1]} : vector<8x512xbf16> to vector<1x256xbf16>
    %cst_31 = arith.constant dense<0.000000e+00> : vector<1x128xf32>
    %53 = tpu.matmul %52, %51, %cst_31 {dimension_numbers = #tpu.dot_dimension_numbers<[1], [0], [0], [1], [0, 0, 1, 1], [], []>} : vector<1x256xbf16>, vector<256x128xbf16>, vector<1x128xf32> -> vector<1x128xf32>
    %54 = arith.addf %46, %53 : vector<1x128xf32>
    %55 = vector.extract_strided_slice %8 {offsets = [5, 256], sizes = [1, 256], strides = [1, 1]} : vector<8x512xbf16> to vector<1x256xbf16>
    %cst_32 = arith.constant dense<0.000000e+00> : vector<1x128xf32>
    %56 = tpu.matmul %55, %51, %cst_32 {dimension_numbers = #tpu.dot_dimension_numbers<[1], [0], [0], [1], [0, 0, 1, 1], [], []>} : vector<1x256xbf16>, vector<256x128xbf16>, vector<1x128xf32> -> vector<1x128xf32>
    %57 = arith.addf %49, %56 : vector<1x128xf32>
    %c6 = arith.constant 6 : index
    %c0_33 = arith.constant 0 : index
    %c0_34 = arith.constant 0 : index
    %58 = vector.load %arg3[%c6, %c0_33, %c0_34] : memref<8x256x128xbf16, #tpu.memory_space<vmem>>, vector<1x256x128xbf16>
    %59 = vector.shape_cast %58 : vector<1x256x128xbf16> to vector<256x128xbf16>
    %60 = vector.extract_strided_slice %8 {offsets = [6, 0], sizes = [1, 256], strides = [1, 1]} : vector<8x512xbf16> to vector<1x256xbf16>
    %cst_35 = arith.constant dense<0.000000e+00> : vector<1x128xf32>
    %61 = tpu.matmul %60, %59, %cst_35 {dimension_numbers = #tpu.dot_dimension_numbers<[1], [0], [0], [1], [0, 0, 1, 1], [], []>} : vector<1x256xbf16>, vector<256x128xbf16>, vector<1x128xf32> -> vector<1x128xf32>
    %62 = arith.addf %54, %61 : vector<1x128xf32>
    %63 = vector.extract_strided_slice %8 {offsets = [6, 256], sizes = [1, 256], strides = [1, 1]} : vector<8x512xbf16> to vector<1x256xbf16>
    %cst_36 = arith.constant dense<0.000000e+00> : vector<1x128xf32>
    %64 = tpu.matmul %63, %59, %cst_36 {dimension_numbers = #tpu.dot_dimension_numbers<[1], [0], [0], [1], [0, 0, 1, 1], [], []>} : vector<1x256xbf16>, vector<256x128xbf16>, vector<1x128xf32> -> vector<1x128xf32>
    %65 = arith.addf %57, %64 : vector<1x128xf32>
    %c7 = arith.constant 7 : index
    %c0_37 = arith.constant 0 : index
    %c0_38 = arith.constant 0 : index
    %66 = vector.load %arg3[%c7, %c0_37, %c0_38] : memref<8x256x128xbf16, #tpu.memory_space<vmem>>, vector<1x256x128xbf16>
    %67 = vector.shape_cast %66 : vector<1x256x128xbf16> to vector<256x128xbf16>
    %68 = vector.extract_strided_slice %8 {offsets = [7, 0], sizes = [1, 256], strides = [1, 1]} : vector<8x512xbf16> to vector<1x256xbf16>
    %cst_39 = arith.constant dense<0.000000e+00> : vector<1x128xf32>
    %69 = tpu.matmul %68, %67, %cst_39 {dimension_numbers = #tpu.dot_dimension_numbers<[1], [0], [0], [1], [0, 0, 1, 1], [], []>} : vector<1x256xbf16>, vector<256x128xbf16>, vector<1x128xf32> -> vector<1x128xf32>
    %70 = arith.addf %62, %69 : vector<1x128xf32>
    %71 = vector.extract_strided_slice %8 {offsets = [7, 256], sizes = [1, 256], strides = [1, 1]} : vector<8x512xbf16> to vector<1x256xbf16>
    %cst_40 = arith.constant dense<0.000000e+00> : vector<1x128xf32>
    %72 = tpu.matmul %71, %67, %cst_40 {dimension_numbers = #tpu.dot_dimension_numbers<[1], [0], [0], [1], [0, 0, 1, 1], [], []>} : vector<1x256xbf16>, vector<256x128xbf16>, vector<1x128xf32> -> vector<1x128xf32>
    %73 = arith.addf %65, %72 : vector<1x128xf32>
    %74 = tpu.concatenate %70, %73 in 0 : vector<1x128xf32>, vector<1x128xf32> -> vector<2x128xf32>
    %c0_41 = arith.constant 0 : index
    %c0_42 = arith.constant 0 : index
    %75 = vector.load %arg5[%c0_41, %c0_42] : memref<2x128xf32, #tpu.memory_space<vmem>>, vector<2x128xf32>
    tpu.vector_store %arg5[%c0_41, %c0_42], %74 {strides = array<i32>} : memref<2x128xf32, #tpu.memory_space<vmem>>, vector<2x128xf32>,
    return
  }
}

</mosaic_0001>

<bundles_post_ra>
// kernel: _model_forward.1
= control target key start
LH: loop header
LB: loop body
LE: loop exit
PB: predicated region body
PF: predicated region fallthrough
CT: control target
= control target key end

     0   :  { %vm93_vm0 = vcmask 1041408   ;;  %v2864_v15 = vmov 0   ;;  %vm89_vm1 = vcmask 293888   ;;  %s3374_s0 = inlined_call_operand.vmem [shape: bf16[36,512], index: 0, kind: input, shape index: {}]   ;;  %s3375_s1 = inlined_call_operand.vmem [shape: bf16[8,36], index: 1, kind: input, shape index: {}]   ;;  %s3376_s2 = inlined_call_operand.vmem [shape: f32[8,1], index: 2, kind: input, shape index: {}]   ;;  %s3377_s3 = inlined_call_operand.vmem [shape: bf16[8,256,128], index: 3, kind: input, shape index: {}]   ;;  %s3378_s4 = inlined_call_operand.vmem [shape: f32[1,128], index: 4, kind: input, shape index: {}]   ;;  %s3379_s5 = inlined_call_operand.hbm [shape: f32[2,128], index: 5, kind: output, shape index: {}]  }
   0x1   :  { %v31_v0 = vld [vmem:[%s3374_s0 + $0x40] sm:$0x33]  ;;  %v32_v1 = vld [vmem:[%s3374_s0 + $0x48] sm:$0x33]  ;;  %138 = vmatprep.mubr.bf16.mxu0 %v2864_v15  ;;  %179 = vmatprep.mubr.bf16.mxu1 %v2864_v15  ;;  %v2714_v18 = vld [vmem:[%s3377_s3 + $0x78] sm:$0xff]  }
   0x2   :  { %v1984_v2 = vcombine.high %v31_v0, %v31_v0  ;;  %v1986_v3 = vcombine.high %v32_v1, %v32_v1  ;;  %v1983_v4 = vcombine.low %v31_v0, %v31_v0  ;;  %v1985_v5 = vcombine.low %v32_v1, %v32_v1  ;;  %v2702_v6 = vld [vmem:[%s3374_s0 + $0x24] ss:$16 sps:$4 sm:$0xff]   ;;  %v2704_v7 = vld [vmem:[%s3374_s0 + $0x2c] ss:$16 sps:$4 sm:$0xff]   ;;  %v2706_v8 = vld [vmem:[%s3374_s0 + $0x20] ss:$16 sps:$4 sm:$0xff]   ;;  %2697 = vset.pattern.permute.xlu0 %v2864_v15 }
   0x3   :  { %v2707_v11 = vld [vmem:[%s3374_s0 + $0x28] ss:$16 sps:$4 sm:$0xff]   ;;  %v2708_v12 = vld [vmem:[%s3374_s0 + $0x4] ss:$16 sps:$4 sm:$0xff]   ;;  %v2710_v13 = vld [vmem:[%s3374_s0 + $0xc] ss:$16 sps:$4 sm:$0xff]  }
   0x4   :  { %1987 = vmatprep.subr.msk.bf16.mxu0 %vm93_vm0, %v1984_v2  ;;  %1989 = vmatprep.subr.msk.bf16.mxu1 %vm93_vm0, %v1986_v3  ;;  %v95_v9 = vsel %vm93_vm0, %v1983_v4, 0  ;;  %v101_v10 = vsel %vm93_vm0, %v1985_v5, 0  ;;  %v2712_v14 = vld [vmem:[%s3374_s0] ss:$16 sps:$4 sm:$0xff]   ;;  %v2713_v17 = vld [vmem:[%s3374_s0 + $0x8] ss:$16 sps:$4 sm:$0xff]  }
   0x5   :  { %117 = vmatpush1.bf16.msra.mxu0 %v95_v9  ;;  %158 = vmatpush1.bf16.msra.mxu1 %v101_v10  ;;  %v33_v16 = vld [vmem:[%s3376_s2] sm:$0xff]  ;;  %v2715_v20 = vld [vmem:[%s3377_s3 + $0x38] sm:$0xff]   ;;  %v2716_v21 = vld [vmem:[%s3377_s3 + $0x70] sm:$0xff]  }
   0x6   :  { %118 = vmatprep.subr.bf16.mxu0 %v2702_v6  ;;  %159 = vmatprep.subr.bf16.mxu1 %v2704_v7  ;;  %v22_v19 = vld [vmem:[%s3375_s1] sm:$0xf]  ;;  %v2717_v22 = vld [vmem:[%s3377_s3 + $0x30] sm:$0xff]   ;;  %v2718_v23 = vld [vmem:[%s3377_s3 + $0x68] sm:$0xff]  }
   0x7   :  { %36 = vperm.xlu0 %2697, %v33_v16   ;;  %v2719_v24 = vld [vmem:[%s3377_s3 + $0x28] sm:$0xff]   ;;  %v2720_v25 = vld [vmem:[%s3377_s3 + $0x60] sm:$0xff]   ;;  %v2722_v27 = vld [vmem:[%s3377_s3 + $0x58] sm:$0xff]  }
   0x8   :  { %v2721_v26 = vld [vmem:[%s3377_s3 + $0x20] sm:$0xff]   ;;  %v2723_v28 = vld [vmem:[%s3377_s3 + $0x18] sm:$0xff]   ;;  %v2724_v29 = vld [vmem:[%s3377_s3 + $0x50] sm:$0xff]  }
   0x9   :  { %119 = vmatpush1.bf16.msra.mxu0 %v2706_v8  ;;  %160 = vmatpush1.bf16.msra.mxu1 %v2707_v11  ;;  %v2725_v30 = vld [vmem:[%s3377_s3 + $0x10] sm:$0xff]   ;;  %v2726_v31 = vld [vmem:[%s3377_s3 + $0x48] sm:$0xff]   ;;  %v2728_v33 = vld [vmem:[%s3377_s3 + $0x40] sm:$0xff]  }
   0xa   :  { %120 = vmatprep.subr.bf16.mxu0 %v2708_v12  ;;  %161 = vmatprep.subr.bf16.mxu1 %v2710_v13  ;;  %v2727_v32 = vld [vmem:[%s3377_s3 + $0x8] sm:$0xff]   ;;  %v2729_v34 = vld [vmem:[%s3377_s3] sm:$0xff]   ;;  %v2730_v35 = vld [vmem:[%s3377_s3 + $0xf8] sm:$0xff]  }
   0xd   :  { %121 = vmatpush1.bf16.msra.mxu0 %v2712_v14  ;;  %162 = vmatpush1.bf16.msra.mxu1 %v2713_v17 }
   0xe   :  { %2343 = vmatprep.subr.bf16.mxu0 %v2714_v18  ;;  %2365 = vmatprep.subr.bf16.mxu1 %v2714_v18 }
  0x10   :  { %1988 = vmatmul.mubr.msk.bf16.vlgmr.msra.gmra.mxu0 %vm89_vm1, %v22_v19  ;;  %1990 = vmatmul.mubr.msk.bf16.vlgmr.msra.gmra.mxu1 %vm89_vm1, %v22_v19 }
  0x11   :  { %2344 = vmatpush3.bf16.msra.mxu0 %v2715_v20  ;;  %2366 = vmatpush3.bf16.msra.mxu1 %v2715_v20 }
  0x12   :  { %2345 = vmatprep.subr.bf16.mxu0 %v2716_v21  ;;  %2367 = vmatprep.subr.bf16.mxu1 %v2716_v21 }
  0x15   :  { %2346 = vmatpush3.bf16.msra.mxu0 %v2717_v22  ;;  %2368 = vmatpush3.bf16.msra.mxu1 %v2717_v22 }
  0x16   :  { %2347 = vmatprep.subr.bf16.mxu0 %v2718_v23  ;;  %2369 = vmatprep.subr.bf16.mxu1 %v2718_v23 }
  0x19   :  { %2348 = vmatpush3.bf16.msra.mxu0 %v2719_v24  ;;  %2370 = vmatpush3.bf16.msra.mxu1 %v2719_v24 }
  0x1a   :  { %2349 = vmatprep.subr.bf16.mxu0 %v2720_v25  ;;  %2371 = vmatprep.subr.bf16.mxu1 %v2720_v25 }
  0x1d   :  { %2350 = vmatpush3.bf16.msra.mxu0 %v2721_v26  ;;  %2372 = vmatpush3.bf16.msra.mxu1 %v2721_v26 }
  0x1e   :  { %2351 = vmatprep.subr.bf16.mxu0 %v2722_v27  ;;  %2373 = vmatprep.subr.bf16.mxu1 %v2722_v27 }
  0x21   :  { %2352 = vmatpush3.bf16.msra.mxu0 %v2723_v28  ;;  %2374 = vmatpush3.bf16.msra.mxu1 %v2723_v28 }
  0x22   :  { %2353 = vmatprep.subr.bf16.mxu0 %v2724_v29  ;;  %2375 = vmatprep.subr.bf16.mxu1 %v2724_v29 }
  0x25   :  { %2354 = vmatpush3.bf16.msra.mxu0 %v2725_v30  ;;  %2376 = vmatpush3.bf16.msra.mxu1 %v2725_v30 }
  0x26   :  { %2355 = vmatprep.subr.bf16.mxu0 %v2726_v31  ;;  %2377 = vmatprep.subr.bf16.mxu1 %v2726_v31 }
  0x29   :  { %2356 = vmatpush3.bf16.msra.mxu0 %v2727_v32  ;;  %2378 = vmatpush3.bf16.msra.mxu1 %v2727_v32 }
  0x2a   :  { %2357 = vmatprep.subr.bf16.mxu0 %v2728_v33  ;;  %2379 = vmatprep.subr.bf16.mxu1 %v2728_v33 }
  0x2d   :  { %2358 = vmatpush3.bf16.msra.mxu0 %v2729_v34  ;;  %2380 = vmatpush3.bf16.msra.mxu1 %v2729_v34 }
  0x2e   :  { %2387 = vmatprep.subr.bf16.mxu0 %v2730_v35  ;;  %2409 = vmatprep.subr.bf16.mxu1 %v2730_v35 }
  0x2f   :  { %10 = vsyncpa [#allocation3], 0  ;;  %v2731_v56 = vld [vmem:[%s3377_s3 + $0xb8] sm:$0xff]   ;;  %v2732_v60 = vld [vmem:[%s3377_s3 + $0xf0] sm:$0xff]   ;;  %vm1958_vm2 = vcmask 1040384  }
  0x30   :  { %v2733_v61 = vld [vmem:[%s3377_s3 + $0xb0] sm:$0xff]   ;;  %v2734_v62 = vld [vmem:[%s3377_s3 + $0xe8] sm:$0xff]   ;;  %v2736_v0 = vld [vmem:[%s3377_s3 + $0xe0] sm:$0xff]  }
  0x31   :  { %v2735_v63 = vld [vmem:[%s3377_s3 + $0xa8] sm:$0xff]   ;;  %v2737_v1 = vld [vmem:[%s3377_s3 + $0xa0] sm:$0xff]   ;;  %v2738_v2 = vld [vmem:[%s3377_s3 + $0xd8] sm:$0xff]  }
  0x32   :  { %v2739_v3 = vld [vmem:[%s3377_s3 + $0x98] sm:$0xff]   ;;  %v2740_v4 = vld [vmem:[%s3377_s3 + $0xd0] sm:$0xff]   ;;  %v2742_v6 = vld [vmem:[%s3377_s3 + $0xc8] sm:$0xff]  }
  0x33   :  { %v2741_v5 = vld [vmem:[%s3377_s3 + $0x90] sm:$0xff]   ;;  %v2743_v7 = vld [vmem:[%s3377_s3 + $0x88] sm:$0xff]   ;;  %v2744_v8 = vld [vmem:[%s3377_s3 + $0xc0] sm:$0xff]  }
  0x34   :  { %v2745_v9 = vld [vmem:[%s3377_s3 + $0x80] sm:$0xff]   ;;  %v2746_v10 = vld [vmem:[%s3377_s3 + $0x178] sm:$0xff]   ;;  %v2748_v15 = vld [vmem:[%s3377_s3 + $0x170] sm:$0xff]  }
  0x35   :  { %v2747_v11 = vld [vmem:[%s3377_s3 + $0x138] sm:$0xff]   ;;  %v2749_v17 = vld [vmem:[%s3377_s3 + $0x130] sm:$0xff]   ;;  %v2750_v18 = vld [vmem:[%s3377_s3 + $0x168] sm:$0xff]  }
  0x36   :  { %v2751_v19 = vld [vmem:[%s3377_s3 + $0x128] sm:$0xff]   ;;  %v2752_v20 = vld [vmem:[%s3377_s3 + $0x160] sm:$0xff]   ;;  %v2754_v22 = vld [vmem:[%s3377_s3 + $0x158] sm:$0xff]  }
  0x37   :  { %v2753_v21 = vld [vmem:[%s3377_s3 + $0x120] sm:$0xff]   ;;  %v2755_v23 = vld [vmem:[%s3377_s3 + $0x118] sm:$0xff]   ;;  %v2756_v24 = vld [vmem:[%s3377_s3 + $0x150] sm:$0xff]  }
  0x38   :  { %v2757_v25 = vld [vmem:[%s3377_s3 + $0x110] sm:$0xff]   ;;  %v2758_v26 = vld [vmem:[%s3377_s3 + $0x148] sm:$0xff]   ;;  %v2760_v28 = vld [vmem:[%s3377_s3 + $0x140] sm:$0xff]  }
  0x39   :  { %v2759_v27 = vld [vmem:[%s3377_s3 + $0x108] sm:$0xff]   ;;  %v2761_v29 = vld [vmem:[%s3377_s3 + $0x100] sm:$0xff]   ;;  %v2762_v30 = vld [vmem:[%s3377_s3 + $0x1f8] sm:$0xff]  }
  0x3a   :  { %v2763_v31 = vld [vmem:[%s3377_s3 + $0x1b8] sm:$0xff]   ;;  %v2764_v34 = vld [vmem:[%s3377_s3 + $0x1f0] sm:$0xff]  }
  0x82   :  { %v37_v36 = vpop.permute.xlu0 %36 }
  0xd0   :  { %v140_v37 = vpop.f32.mrf.mxu0  ;;  %v181_v38 = vpop.f32.mrf.mxu1 }
  0xd1   :  { %v141_v39 = vadd.f32 %v140_v37, %v37_v36  ;;  %v182_v40 = vadd.f32 %v181_v38, %v37_v36  ;;  %v2765_v37 = vld [vmem:[%s3377_s3 + $0x1b0] sm:$0xff]   ;;  %v2766_v38 = vld [vmem:[%s3377_s3 + $0x1e8] sm:$0xff]  }
  0xd2   :  { %v142_v41 = vpop.f32.mrf.mxu0  ;;  %v183_v42 = vpop.f32.mrf.mxu1 }
  0xd3   :  { %v188_v43 = vmax.f32 %v141_v39, 0.0  ;;  %v143_v44 = vadd.f32 %v142_v41, %v37_v36  ;;  %v184_v45 = vadd.f32 %v183_v42, %v37_v36  ;;  %v190_v46 = vmax.f32 %v182_v40, 0.0  ;;  %v2767_v39 = vld [vmem:[%s3377_s3 + $0x1a8] sm:$0xff]   ;;  %v2768_v40 = vld [vmem:[%s3377_s3 + $0x1e0] sm:$0xff]   ;;  %v2770_v42 = vld [vmem:[%s3377_s3 + $0x1d8] sm:$0xff]  }
  0xd4   :  { %v144_v47 = vpop.f32.mrf.mxu0  ;;  %v185_v48 = vpop.f32.mrf.mxu1  ;;  %v2769_v41 = vld [vmem:[%s3377_s3 + $0x1a0] sm:$0xff]  }
  0xd5   :  { %v189_v49 = vmax.f32 %v143_v44, 0.0  ;;  %v191_v50 = vmax.f32 %v184_v45, 0.0  ;;  %v2983_v51 = vpack.c.bf16 %v188_v43, %v188_v43  ;;  %v2992_v57 = vpack.c.bf16 %v190_v46, %v190_v46  ;;  %v2771_v43 = vld [vmem:[%s3377_s3 + $0x198] sm:$0xff]   ;;  %v2772_v44 = vld [vmem:[%s3377_s3 + $0x1d0] sm:$0xff]   ;;  %v2774_v46 = vld [vmem:[%s3377_s3 + $0x1c8] sm:$0xff]  }
  0xd6   :  { %v145_v52 = vpop.f32.mrf.mxu0  ;;  %v186_v53 = vpop.f32.mrf.mxu1  ;;  %v2773_v45 = vld [vmem:[%s3377_s3 + $0x190] sm:$0xff]   ;;  %v2775_v47 = vld [vmem:[%s3377_s3 + $0x188] sm:$0xff]   ;;  %v2776_v48 = vld [vmem:[%s3377_s3 + $0x1c0] sm:$0xff]  }
  0xd7   :  { %v2985_v54 = vpack.c.bf16 %v189_v49, %v189_v49  ;;  %v2987_v55 = vpack.c.bf16 %v191_v50, %v191_v50  ;;  %v3055_v12 = vshrl.u32 %v2983_v51, 16  ;;  %v3058_v13 = vshrl.u32 %v2992_v57, 16  ;;  %v2777_v49 = vld [vmem:[%s3377_s3 + $0x180] sm:$0xff]   ;;  %v2778_v50 = vld [vmem:[%s3377_s3 + $0x278] sm:$0xff]  }
  0xd8   :  { %v669_v32 = vrot.slane %v2983_v51, 1  ;;  %v812_v33 = vrot.slane %v2992_v57, 1  ;;  %v2779_v52 = vld [vmem:[%s3377_s3 + $0x238] sm:$0xff]  }
  0xd9   :  { %357 = vmatprep.mubr.bf16.mxu0 %v2985_v54  ;;  %398 = vmatprep.mubr.bf16.mxu1 %v2987_v55  ;;  %v2997_v58 = vshrl.u32 %v2985_v54, 16  ;;  %v3000_v59 = vshrl.u32 %v2987_v55, 16  ;;  %v670_v14 = vrot.slane %v2985_v54, 1  ;;  %v813_v16 = vrot.slane %v2987_v55, 1 }
  0xda   :  { %358 = vmatmul.mubr.bf16.vlgmr.msra.gmra.mxu0 %v2983_v51  ;;  %399 = vmatmul.mubr.bf16.vlgmr.msra.gmra.mxu1 %v2992_v57  ;;  %v890_v53 = vrot.slane %v3055_v12, 1 }
  0xdb   :  { %2388 = vmatpush3.bf16.msra.mxu0 %v2731_v56  ;;  %2410 = vmatpush3.bf16.msra.mxu1 %v2731_v56  ;;  %v891_v35 = vrot.slane %v2997_v58, 1  ;;  %v1032_v36 = vrot.slane %v3000_v59, 1  ;;  %v1031_v56 = vrot.slane %v3058_v13, 1 }
  0xdc   :  { %576 = vmatprep.mubr.bf16.mxu0 %v2997_v58  ;;  %625 = vmatprep.mubr.bf16.mxu1 %v3000_v59 }
  0xdd   :  { %2389 = vmatprep.subr.bf16.mxu0 %v2732_v60  ;;  %2411 = vmatprep.subr.bf16.mxu1 %v2732_v60  ;;  %v2780_v60 = vld [vmem:[%s3377_s3 + $0x270] sm:$0xff]  }
  0xdf   :  { %2390 = vmatpush3.bf16.msra.mxu0 %v2733_v61  ;;  %2412 = vmatpush3.bf16.msra.mxu1 %v2733_v61  ;;  %v1110_v61 = vrot.slane %v2985_v54, 2 }
  0xe0   :  { %2391 = vmatprep.subr.bf16.mxu0 %v2734_v62  ;;  %2413 = vmatprep.subr.bf16.mxu1 %v2734_v62  ;;  %v1251_v62 = vrot.slane %v2987_v55, 2 }
  0xe3   :  { %2392 = vmatpush3.bf16.msra.mxu0 %v2735_v63  ;;  %2414 = vmatpush3.bf16.msra.mxu1 %v2735_v63  ;;  %v2781_v63 = vld [vmem:[%s3377_s3 + $0x230] sm:$0xff]  }
  0xe4   :  { %2393 = vmatprep.subr.bf16.mxu0 %v2736_v0  ;;  %2415 = vmatprep.subr.bf16.mxu1 %v2736_v0  ;;  %v2782_v0 = vld [vmem:[%s3377_s3 + $0x268] sm:$0xff]  }
  0xe7   :  { %2394 = vmatpush3.bf16.msra.mxu0 %v2737_v1  ;;  %2416 = vmatpush3.bf16.msra.mxu1 %v2737_v1  ;;  %v2783_v1 = vld [vmem:[%s3377_s3 + $0x228] sm:$0xff]  }
  0xe8   :  { %2395 = vmatprep.subr.bf16.mxu0 %v2738_v2  ;;  %2417 = vmatprep.subr.bf16.mxu1 %v2738_v2  ;;  %v2784_v2 = vld [vmem:[%s3377_s3 + $0x260] sm:$0xff]  }
  0xeb   :  { %2396 = vmatpush3.bf16.msra.mxu0 %v2739_v3  ;;  %2418 = vmatpush3.bf16.msra.mxu1 %v2739_v3  ;;  %v2785_v3 = vld [vmem:[%s3377_s3 + $0x220] sm:$0xff]  }
  0xec   :  { %2397 = vmatprep.subr.bf16.mxu0 %v2740_v4  ;;  %2419 = vmatprep.subr.bf16.mxu1 %v2740_v4  ;;  %v2786_v4 = vld [vmem:[%s3377_s3 + $0x258] sm:$0xff]  }
  0xef   :  { %2398 = vmatpush3.bf16.msra.mxu0 %v2741_v5  ;;  %2420 = vmatpush3.bf16.msra.mxu1 %v2741_v5  ;;  %v2787_v5 = vld [vmem:[%s3377_s3 + $0x218] sm:$0xff]  }
  0xf0   :  { %2399 = vmatprep.subr.bf16.mxu0 %v2742_v6  ;;  %2421 = vmatprep.subr.bf16.mxu1 %v2742_v6  ;;  %v2788_v6 = vld [vmem:[%s3377_s3 + $0x250] sm:$0xff]  }
  0xf3   :  { %2400 = vmatpush3.bf16.msra.mxu0 %v2743_v7  ;;  %2422 = vmatpush3.bf16.msra.mxu1 %v2743_v7  ;;  %v2789_v7 = vld [vmem:[%s3377_s3 + $0x210] sm:$0xff]  }
  0xf4   :  { %2401 = vmatprep.subr.bf16.mxu0 %v2744_v8  ;;  %2423 = vmatprep.subr.bf16.mxu1 %v2744_v8  ;;  %v2790_v8 = vld [vmem:[%s3377_s3 + $0x248] sm:$0xff]  }
  0xf7   :  { %2402 = vmatpush3.bf16.msra.mxu0 %v2745_v9  ;;  %2424 = vmatpush3.bf16.msra.mxu1 %v2745_v9  ;;  %v2791_v9 = vld [vmem:[%s3377_s3 + $0x208] sm:$0xff]  }
  0xf8   :  { %2431 = vmatprep.subr.bf16.mxu0 %v2746_v10  ;;  %2453 = vmatprep.subr.bf16.mxu1 %v2746_v10  ;;  %v2792_v10 = vld [vmem:[%s3377_s3 + $0x240] sm:$0xff]  }
  0xfa   :  { %577 = vmatmul.mubr.bf16.vlgmr.msra.gmra.mxu0 %v3055_v12  ;;  %626 = vmatmul.mubr.bf16.vlgmr.msra.gmra.mxu1 %v3058_v13 }
  0xfb   :  { %2432 = vmatpush3.bf16.msra.mxu0 %v2747_v11  ;;  %801 = vmatprep.mubr.bf16.mxu0 %v670_v14  ;;  %v2794_v14 = vld [vmem:[%s3377_s3 + $0x2f8] sm:$0xff]  }
  0xfc   :  { %2454 = vmatpush3.bf16.msra.mxu1 %v2747_v11  ;;  %848 = vmatprep.mubr.bf16.mxu1 %v813_v16  ;;  %v2793_v11 = vld [vmem:[%s3377_s3 + $0x200] sm:$0xff]   ;;  %v1109_v16 = vrot.slane %v2983_v51, 2 }
  0xfd   :  { %2433 = vmatprep.subr.bf16.mxu0 %v2748_v15  ;;  %2455 = vmatprep.subr.bf16.mxu1 %v2748_v15  ;;  %v2795_v15 = vld [vmem:[%s3377_s3 + $0x2b8] sm:$0xff]  }
  0xff   :  { %2434 = vmatpush3.bf16.msra.mxu0 %v2749_v17 }
 0x100   :  { %2456 = vmatpush3.bf16.msra.mxu1 %v2749_v17  ;;  %2435 = vmatprep.subr.bf16.mxu0 %v2750_v18  ;;  %v1250_v17 = vrot.slane %v2992_v57, 2 }
 0x101   :  { %2457 = vmatprep.subr.bf16.mxu1 %v2750_v18  ;;  %v2796_v18 = vld [vmem:[%s3377_s3 + $0x2f0] sm:$0xff]  }
 0x103   :  { %2436 = vmatpush3.bf16.msra.mxu0 %v2751_v19 }
 0x104   :  { %2458 = vmatpush3.bf16.msra.mxu1 %v2751_v19  ;;  %2437 = vmatprep.subr.bf16.mxu0 %v2752_v20  ;;  %v1329_v19 = vrot.slane %v2997_v58, 2 }
 0x105   :  { %2459 = vmatprep.subr.bf16.mxu1 %v2752_v20  ;;  %v1470_v20 = vrot.slane %v3000_v59, 2 }
 0x107   :  { %2438 = vmatpush3.bf16.msra.mxu0 %v2753_v21 }
 0x108   :  { %2460 = vmatpush3.bf16.msra.mxu1 %v2753_v21  ;;  %2439 = vmatprep.subr.bf16.mxu0 %v2754_v22  ;;  %v2797_v21 = vld [vmem:[%s3377_s3 + $0x2b0] sm:$0xff]  }
 0x109   :  { %2461 = vmatprep.subr.bf16.mxu1 %v2754_v22  ;;  %v2798_v22 = vld [vmem:[%s3377_s3 + $0x2e8] sm:$0xff]  }
 0x10b   :  { %2440 = vmatpush3.bf16.msra.mxu0 %v2755_v23 }
 0x10c   :  { %2462 = vmatpush3.bf16.msra.mxu1 %v2755_v23  ;;  %2441 = vmatprep.subr.bf16.mxu0 %v2756_v24  ;;  %v2799_v23 = vld [vmem:[%s3377_s3 + $0x2a8] sm:$0xff]  }
 0x10d   :  { %2463 = vmatprep.subr.bf16.mxu1 %v2756_v24  ;;  %v2800_v24 = vld [vmem:[%s3377_s3 + $0x2e0] sm:$0xff]  }
 0x10f   :  { %2442 = vmatpush3.bf16.msra.mxu0 %v2757_v25 }
 0x110   :  { %2464 = vmatpush3.bf16.msra.mxu1 %v2757_v25  ;;  %2443 = vmatprep.subr.bf16.mxu0 %v2758_v26  ;;  %v2801_v25 = vld [vmem:[%s3377_s3 + $0x2a0] sm:$0xff]  }
 0x111   :  { %2465 = vmatprep.subr.bf16.mxu1 %v2758_v26  ;;  %v2802_v26 = vld [vmem:[%s3377_s3 + $0x2d8] sm:$0xff]  }
 0x113   :  { %2444 = vmatpush3.bf16.msra.mxu0 %v2759_v27 }
 0x114   :  { %2466 = vmatpush3.bf16.msra.mxu1 %v2759_v27  ;;  %2445 = vmatprep.subr.bf16.mxu0 %v2760_v28  ;;  %v2803_v27 = vld [vmem:[%s3377_s3 + $0x298] sm:$0xff]  }
 0x115   :  { %2467 = vmatprep.subr.bf16.mxu1 %v2760_v28  ;;  %v2804_v28 = vld [vmem:[%s3377_s3 + $0x2d0] sm:$0xff]  }
 0x117   :  { %2446 = vmatpush3.bf16.msra.mxu0 %v2761_v29 }
 0x118   :  { %2468 = vmatpush3.bf16.msra.mxu1 %v2761_v29  ;;  %2475 = vmatprep.subr.bf16.mxu0 %v2762_v30  ;;  %v2805_v29 = vld [vmem:[%s3377_s3 + $0x290] sm:$0xff]  }
 0x119   :  { %2497 = vmatprep.subr.bf16.mxu1 %v2762_v30  ;;  %v2806_v30 = vld [vmem:[%s3377_s3 + $0x2c8] sm:$0xff]  }
 0x11a   :  { %802 = vmatmul.mubr.bf16.vlgmr.msra.gmra.mxu0 %v669_v32  ;;  %v2808_v32 = vld [vmem:[%s3377_s3 + $0x2c0] sm:$0xff]  }
 0x11b   :  { %849 = vmatmul.mubr.bf16.vlgmr.msra.gmra.mxu1 %v812_v33  ;;  %2476 = vmatpush3.bf16.msra.mxu0 %v2763_v31  ;;  %v2809_v33 = vld [vmem:[%s3377_s3 + $0x280] sm:$0xff]  }
 0x11c   :  { %1022 = vmatprep.mubr.bf16.mxu0 %v891_v35  ;;  %2498 = vmatpush3.bf16.msra.mxu1 %v2763_v31  ;;  %v2807_v31 = vld [vmem:[%s3377_s3 + $0x288] sm:$0xff]   ;;  %v2811_v35 = vld [vmem:[%s3377_s3 + $0x338] sm:$0xff]  }
 0x11d   :  { %1067 = vmatprep.mubr.bf16.mxu1 %v1032_v36  ;;  %2477 = vmatprep.subr.bf16.mxu0 %v2764_v34  ;;  %v1328_v36 = vrot.slane %v3055_v12, 2 }
 0x11e   :  { %2499 = vmatprep.subr.bf16.mxu1 %v2764_v34  ;;  %v2810_v34 = vld [vmem:[%s3377_s3 + $0x378] sm:$0xff]  }
 0x11f   :  { %2478 = vmatpush3.bf16.msra.mxu0 %v2765_v37 }
 0x120   :  { %2500 = vmatpush3.bf16.msra.mxu1 %v2765_v37  ;;  %2479 = vmatprep.subr.bf16.mxu0 %v2766_v38  ;;  %v1469_v37 = vrot.slane %v3058_v13, 2 }
 0x121   :  { %2501 = vmatprep.subr.bf16.mxu1 %v2766_v38  ;;  %v2812_v38 = vld [vmem:[%s3377_s3 + $0x370] sm:$0xff]  }
 0x123   :  { %2480 = vmatpush3.bf16.msra.mxu0 %v2767_v39 }
 0x124   :  { %2502 = vmatpush3.bf16.msra.mxu1 %v2767_v39  ;;  %2481 = vmatprep.subr.bf16.mxu0 %v2768_v40  ;;  %v1548_v39 = vrot.slane %v2985_v54, 3  ;;  %v2815_v54 = vld [vmem:[%s3377_s3 + $0x328] sm:$0xff]  }
 0x125   :  { %2503 = vmatprep.subr.bf16.mxu1 %v2768_v40  ;;  %v1689_v40 = vrot.slane %v2987_v55, 3  ;;  %v2816_v55 = vld [vmem:[%s3377_s3 + $0x360] sm:$0xff]  }
 0x127   :  { %2482 = vmatpush3.bf16.msra.mxu0 %v2769_v41 }
 0x128   :  { %2504 = vmatpush3.bf16.msra.mxu1 %v2769_v41  ;;  %2483 = vmatprep.subr.bf16.mxu0 %v2770_v42  ;;  %v2813_v41 = vld [vmem:[%s3377_s3 + $0x330] sm:$0xff]  }
 0x129   :  { %2505 = vmatprep.subr.bf16.mxu1 %v2770_v42  ;;  %v2814_v42 = vld [vmem:[%s3377_s3 + $0x368] sm:$0xff]  }
 0x12b   :  { %2484 = vmatpush3.bf16.msra.mxu0 %v2771_v43 }
 0x12c   :  { %2506 = vmatpush3.bf16.msra.mxu1 %v2771_v43  ;;  %2485 = vmatprep.subr.bf16.mxu0 %v2772_v44  ;;  %v2817_v43 = vld [vmem:[%s3377_s3 + $0x320] sm:$0xff]  }
 0x12d   :  { %2507 = vmatprep.subr.bf16.mxu1 %v2772_v44  ;;  %v2818_v44 = vld [vmem:[%s3377_s3 + $0x358] sm:$0xff]  }
 0x12f   :  { %2486 = vmatpush3.bf16.msra.mxu0 %v2773_v45 }
 0x130   :  { %2508 = vmatpush3.bf16.msra.mxu1 %v2773_v45  ;;  %2487 = vmatprep.subr.bf16.mxu0 %v2774_v46  ;;  %v2819_v45 = vld [vmem:[%s3377_s3 + $0x318] sm:$0xff]  }
 0x131   :  { %2509 = vmatprep.subr.bf16.mxu1 %v2774_v46  ;;  %v2820_v46 = vld [vmem:[%s3377_s3 + $0x350] sm:$0xff]  }
 0x133   :  { %2488 = vmatpush3.bf16.msra.mxu0 %v2775_v47 }
 0x134   :  { %2510 = vmatpush3.bf16.msra.mxu1 %v2775_v47  ;;  %2489 = vmatprep.subr.bf16.mxu0 %v2776_v48  ;;  %v2821_v47 = vld [vmem:[%s3377_s3 + $0x310] sm:$0xff]  }
 0x135   :  { %2511 = vmatprep.subr.bf16.mxu1 %v2776_v48  ;;  %v2822_v48 = vld [vmem:[%s3377_s3 + $0x348] sm:$0xff]  }
 0x137   :  { %2490 = vmatpush3.bf16.msra.mxu0 %v2777_v49 }
 0x138   :  { %2512 = vmatpush3.bf16.msra.mxu1 %v2777_v49  ;;  %2519 = vmatprep.subr.bf16.mxu0 %v2778_v50  ;;  %v2823_v49 = vld [vmem:[%s3377_s3 + $0x308] sm:$0xff]  }
 0x139   :  { %2541 = vmatprep.subr.bf16.mxu1 %v2778_v50  ;;  %v2824_v50 = vld [vmem:[%s3377_s3 + $0x340] sm:$0xff]  }
 0x13a   :  { %1023 = vmatmul.mubr.bf16.vlgmr.msra.gmra.mxu0 %v890_v53  ;;  %v2826_v53 = vld [vmem:[%s3377_s3 + $0x3f8] sm:$0xff]  }
 0x13b   :  { %1068 = vmatmul.mubr.bf16.vlgmr.msra.gmra.mxu1 %v1031_v56  ;;  %2520 = vmatpush3.bf16.msra.mxu0 %v2779_v52  ;;  %v2827_v56 = vld [vmem:[%s3377_s3 + $0x3b8] sm:$0xff]  }
 0x13c   :  { %1241 = vmatprep.mubr.bf16.mxu0 %v1110_v61  ;;  %2542 = vmatpush3.bf16.msra.mxu1 %v2779_v52  ;;  %v2825_v52 = vld [vmem:[%s3377_s3 + $0x300] sm:$0xff]   ;;  %v1688_v61 = vrot.slane %v2992_v57, 3 }
 0x13d   :  { %1286 = vmatprep.mubr.bf16.mxu1 %v1251_v62  ;;  %2521 = vmatprep.subr.bf16.mxu0 %v2780_v60  ;;  %v2828_v62 = vld [vmem:[%s3377_s3 + $0x3f0] sm:$0xff]  }
 0x13e   :  { %2543 = vmatprep.subr.bf16.mxu1 %v2780_v60  ;;  %v1547_v60 = vrot.slane %v2983_v51, 3  ;;  %v2829_v51 = vld [vmem:[%s3377_s3 + $0x3b0] sm:$0xff]  }
 0x13f   :  { %2522 = vmatpush3.bf16.msra.mxu0 %v2781_v63 }
 0x140   :  { %2544 = vmatpush3.bf16.msra.mxu1 %v2781_v63  ;;  %2523 = vmatprep.subr.bf16.mxu0 %v2782_v0 }
 0x141   :  { %2545 = vmatprep.subr.bf16.mxu1 %v2782_v0 }
 0x143   :  { %2524 = vmatpush3.bf16.msra.mxu0 %v2783_v1 }
 0x144   :  { %2546 = vmatpush3.bf16.msra.mxu1 %v2783_v1  ;;  %2525 = vmatprep.subr.bf16.mxu0 %v2784_v2  ;;  %v1767_v1 = vrot.slane %v2997_v58, 3 }
 0x145   :  { %2547 = vmatprep.subr.bf16.mxu1 %v2784_v2  ;;  %v1908_v2 = vrot.slane %v3000_v59, 3  ;;  %v2831_v59 = vld [vmem:[%s3377_s3 + $0x3a8] sm:$0xff]  }
 0x147   :  { %2526 = vmatpush3.bf16.msra.mxu0 %v2785_v3 }
 0x148   :  { %2548 = vmatpush3.bf16.msra.mxu1 %v2785_v3  ;;  %2527 = vmatprep.subr.bf16.mxu0 %v2786_v4 }
 0x149   :  { %2549 = vmatprep.subr.bf16.mxu1 %v2786_v4  ;;  %v2830_v4 = vld [vmem:[%s3377_s3 + $0x3e8] sm:$0xff]  }
 0x14b   :  { %2528 = vmatpush3.bf16.msra.mxu0 %v2787_v5 }
 0x14c   :  { %2550 = vmatpush3.bf16.msra.mxu1 %v2787_v5  ;;  %2529 = vmatprep.subr.bf16.mxu0 %v2788_v6 }
 0x14d   :  { %2551 = vmatprep.subr.bf16.mxu1 %v2788_v6 }
 0x14f   :  { %2530 = vmatpush3.bf16.msra.mxu0 %v2789_v7 }
 0x150   :  { %2552 = vmatpush3.bf16.msra.mxu1 %v2789_v7  ;;  %2531 = vmatprep.subr.bf16.mxu0 %v2790_v8 }
 0x151   :  { %2553 = vmatprep.subr.bf16.mxu1 %v2790_v8 }
 0x153   :  { %2532 = vmatpush3.bf16.msra.mxu0 %v2791_v9 }
 0x154   :  { %2554 = vmatpush3.bf16.msra.mxu1 %v2791_v9  ;;  %2533 = vmatprep.subr.bf16.mxu0 %v2792_v10 }
 0x155   :  { %2555 = vmatprep.subr.bf16.mxu1 %v2792_v10  ;;  %v2832_v10 = vld [vmem:[%s3377_s3 + $0x3e0] sm:$0xff]  }
 0x157   :  { %2534 = vmatpush3.bf16.msra.mxu0 %v2793_v11 }
 0x158   :  { %2556 = vmatpush3.bf16.msra.mxu1 %v2793_v11  ;;  %2563 = vmatprep.subr.bf16.mxu0 %v2794_v14  ;;  %v2833_v11 = vld [vmem:[%s3377_s3 + $0x3a0] sm:$0xff]  }
 0x159   :  { %2585 = vmatprep.subr.bf16.mxu1 %v2794_v14  ;;  %v2834_v14 = vld [vmem:[%s3377_s3 + $0x3d8] sm:$0xff]  }
 0x15a   :  { %1242 = vmatmul.mubr.bf16.vlgmr.msra.gmra.mxu0 %v1109_v16  ;;  %v2836_v16 = vld [vmem:[%s3377_s3 + $0x3d0] sm:$0xff]  }
 0x15b   :  { %1287 = vmatmul.mubr.bf16.vlgmr.msra.gmra.mxu1 %v1250_v17  ;;  %2564 = vmatpush3.bf16.msra.mxu0 %v2795_v15  ;;  %v2837_v17 = vld [vmem:[%s3377_s3 + $0x390] sm:$0xff]  }
 0x15c   :  { %1460 = vmatprep.mubr.bf16.mxu0 %v1329_v19  ;;  %2586 = vmatpush3.bf16.msra.mxu1 %v2795_v15  ;;  %v2835_v15 = vld [vmem:[%s3377_s3 + $0x398] sm:$0xff]   ;;  %v2839_v19 = vld [vmem:[%s3377_s3 + $0x388] sm:$0xff]  }
 0x15d   :  { %1505 = vmatprep.mubr.bf16.mxu1 %v1470_v20  ;;  %2565 = vmatprep.subr.bf16.mxu0 %v2796_v18  ;;  %v2840_v20 = vld [vmem:[%s3377_s3 + $0x3c0] sm:$0xff]  }
 0x15e   :  { %2587 = vmatprep.subr.bf16.mxu1 %v2796_v18  ;;  %v2838_v18 = vld [vmem:[%s3377_s3 + $0x3c8] sm:$0xff]  }
 0x15f   :  { %2566 = vmatpush3.bf16.msra.mxu0 %v2797_v21 }
 0x160   :  { %2588 = vmatpush3.bf16.msra.mxu1 %v2797_v21  ;;  %2567 = vmatprep.subr.bf16.mxu0 %v2798_v22  ;;  %v2841_v21 = vld [vmem:[%s3377_s3 + $0x380] sm:$0xff]   ;;  %s2865_s3 = smov [#allocation2]  }
 0x161   :  { %2589 = vmatprep.subr.bf16.mxu1 %v2798_v22  ;;  %v1766_v22 = vrot.slane %v3055_v12, 3 }
 0x163   :  { %2568 = vmatpush3.bf16.msra.mxu0 %v2799_v23 }
 0x164   :  { %2590 = vmatpush3.bf16.msra.mxu1 %v2799_v23  ;;  %2569 = vmatprep.subr.bf16.mxu0 %v2800_v24  ;;  %v1907_v23 = vrot.slane %v3058_v13, 3 }
 0x165   :  { %2591 = vmatprep.subr.bf16.mxu1 %v2800_v24  ;;  %v196_v24 = vld [vmem:[%s3378_s4] sm:$0x1]  ;;  %s1967_s4 = sshll.u32 %s2865_s3, 4  ;;  %s1968_s4 = int_to_ptr.vmem [resolvable:$true] %s1967_s4 }
 0x166   :  { %s2842_s21 = scalar_lea.vmem %s1968_s4, 32  ;;  %p2847_p1 = scmp.lt.s32.totalorder %s1968_s4, %s1968_s4 }
 0x167   :  { %2570 = vmatpush3.bf16.msra.mxu0 %v2801_v25  ;;  %p2843_p0 = scmp.ne.s32.totalorder %s1968_s4, %s2842_s21  ;;  %p2848_p2 = scmp.lt.s32.totalorder %s2842_s21, %s2842_s21 }
 0x168   :  { %2592 = vmatpush3.bf16.msra.mxu1 %v2801_v25  ;;  %2571 = vmatprep.subr.bf16.mxu0 %v2802_v26 }
 0x169   :  { %2593 = vmatprep.subr.bf16.mxu1 %v2802_v26  ;;  %p2849_p3 = por %p2848_p2, %p2847_p1 }
 0x16b   :  { %2572 = vmatpush3.bf16.msra.mxu0 %v2803_v27  ;;  %p2850_p4 = pnand %p2849_p3, %p2843_p0 }
 0x16c   :  { %2594 = vmatpush3.bf16.msra.mxu1 %v2803_v27  ;;  %2573 = vmatprep.subr.bf16.mxu0 %v2804_v28 }
 0x16d   :  { %2595 = vmatprep.subr.bf16.mxu1 %v2804_v28 }
 0x16f   :  { %2574 = vmatpush3.bf16.msra.mxu0 %v2805_v29 }
 0x170   :  { %2596 = vmatpush3.bf16.msra.mxu1 %v2805_v29  ;;  %2575 = vmatprep.subr.bf16.mxu0 %v2806_v30 }
 0x171   :  { %2597 = vmatprep.subr.bf16.mxu1 %v2806_v30 }
 0x173   :  { %2576 = vmatpush3.bf16.msra.mxu0 %v2807_v31 }
 0x174   :  { %2598 = vmatpush3.bf16.msra.mxu1 %v2807_v31  ;;  %2577 = vmatprep.subr.bf16.mxu0 %v2808_v32 }
 0x175   :  { %2599 = vmatprep.subr.bf16.mxu1 %v2808_v32 }
 0x177   :  { %2578 = vmatpush3.bf16.msra.mxu0 %v2809_v33 }
 0x178   :  { %2600 = vmatpush3.bf16.msra.mxu1 %v2809_v33  ;;  %2607 = vmatprep.subr.bf16.mxu0 %v2810_v34 }
 0x179   :  { %2629 = vmatprep.subr.bf16.mxu1 %v2810_v34 }
 0x17a   :  { %1461 = vmatmul.mubr.bf16.vlgmr.msra.gmra.mxu0 %v1328_v36 }
 0x17b   :  { %1506 = vmatmul.mubr.bf16.vlgmr.msra.gmra.mxu1 %v1469_v37  ;;  %2608 = vmatpush3.bf16.msra.mxu0 %v2811_v35 }
 0x17c   :  { %1679 = vmatprep.mubr.bf16.mxu0 %v1548_v39  ;;  %2630 = vmatpush3.bf16.msra.mxu1 %v2811_v35 }
 0x17d   :  { %1724 = vmatprep.mubr.bf16.mxu1 %v1689_v40  ;;  %2609 = vmatprep.subr.bf16.mxu0 %v2812_v38 }
 0x17e   :  { %2631 = vmatprep.subr.bf16.mxu1 %v2812_v38 }
 0x17f   :  { %2610 = vmatpush3.bf16.msra.mxu0 %v2813_v41 }
 0x180   :  { %2632 = vmatpush3.bf16.msra.mxu1 %v2813_v41  ;;  %2611 = vmatprep.subr.bf16.mxu0 %v2814_v42 }
 0x181   :  { %2633 = vmatprep.subr.bf16.mxu1 %v2814_v42 }
 0x183   :  { %2612 = vmatpush3.bf16.msra.mxu0 %v2815_v54 }
 0x184   :  { %2634 = vmatpush3.bf16.msra.mxu1 %v2815_v54  ;;  %2613 = vmatprep.subr.bf16.mxu0 %v2816_v55 }
 0x185   :  { %2635 = vmatprep.subr.bf16.mxu1 %v2816_v55 }
 0x187   :  { %2614 = vmatpush3.bf16.msra.mxu0 %v2817_v43 }
 0x188   :  { %2636 = vmatpush3.bf16.msra.mxu1 %v2817_v43  ;;  %2615 = vmatprep.subr.bf16.mxu0 %v2818_v44 }
 0x189   :  { %2637 = vmatprep.subr.bf16.mxu1 %v2818_v44 }
 0x18b   :  { %2616 = vmatpush3.bf16.msra.mxu0 %v2819_v45 }
 0x18c   :  { %2638 = vmatpush3.bf16.msra.mxu1 %v2819_v45  ;;  %2617 = vmatprep.subr.bf16.mxu0 %v2820_v46 }
 0x18d   :  { %2639 = vmatprep.subr.bf16.mxu1 %v2820_v46 }
 0x18f   :  { %2618 = vmatpush3.bf16.msra.mxu0 %v2821_v47 }
 0x190   :  { %2640 = vmatpush3.bf16.msra.mxu1 %v2821_v47  ;;  %2619 = vmatprep.subr.bf16.mxu0 %v2822_v48 }
 0x191   :  { %2641 = vmatprep.subr.bf16.mxu1 %v2822_v48 }
 0x193   :  { %2620 = vmatpush3.bf16.msra.mxu0 %v2823_v49 }
 0x194   :  { %2642 = vmatpush3.bf16.msra.mxu1 %v2823_v49  ;;  %2621 = vmatprep.subr.bf16.mxu0 %v2824_v50 }
 0x195   :  { %2643 = vmatprep.subr.bf16.mxu1 %v2824_v50 }
 0x197   :  { %2622 = vmatpush3.bf16.msra.mxu0 %v2825_v52 }
 0x198   :  { %2644 = vmatpush3.bf16.msra.mxu1 %v2825_v52  ;;  %2651 = vmatprep.subr.bf16.mxu0 %v2826_v53 }
 0x199   :  { %2673 = vmatprep.subr.bf16.mxu1 %v2826_v53 }
 0x19a   :  { %1680 = vmatmul.mubr.bf16.vlgmr.msra.gmra.mxu0 %v1547_v60  ;;  %v2359_v63 = vpop.f32.mrf.mxu0  ;;  %v2381_v0 = vpop.f32.mrf.mxu1 }
 0x19b   :  { %1725 = vmatmul.mubr.bf16.vlgmr.msra.gmra.mxu1 %v1688_v61  ;;  %2652 = vmatpush3.bf16.msra.mxu0 %v2827_v56 }
 0x19c   :  { %1898 = vmatprep.mubr.bf16.mxu0 %v1767_v1  ;;  %2674 = vmatpush3.bf16.msra.mxu1 %v2827_v56  ;;  %v2360_v57 = vpop.f32.mrf.mxu0  ;;  %v2382_v3 = vpop.f32.mrf.mxu1 }
 0x19d   :  { %1943 = vmatprep.mubr.bf16.mxu1 %v1908_v2  ;;  %v2361_v5 = vadd.f32 %v2360_v57, %v2359_v63  ;;  %v2383_v6 = vadd.f32 %v2382_v3, %v2381_v0  ;;  %2653 = vmatprep.subr.bf16.mxu0 %v2828_v62 }
 0x19e   :  { %2675 = vmatprep.subr.bf16.mxu1 %v2828_v62  ;;  %v2362_v58 = vpop.f32.mrf.mxu0  ;;  %v2384_v7 = vpop.f32.mrf.mxu1 }
 0x19f   :  { %2654 = vmatpush3.bf16.msra.mxu0 %v2829_v51  ;;  %v365_v29 = vadd.f32 %v2361_v5, %v196_v24  ;;  %v406_v30 = vadd.f32 %v2383_v6, %v196_v24 }
 0x1a0   :  { %2676 = vmatpush3.bf16.msra.mxu1 %v2829_v51  ;;  %v2363_v8 = vpop.f32.mrf.mxu0  ;;  %v2385_v9 = vpop.f32.mrf.mxu1  ;;  %2655 = vmatprep.subr.bf16.mxu0 %v2830_v4 }
 0x1a1   :  { %2677 = vmatprep.subr.bf16.mxu1 %v2830_v4 }
 0x1a3   :  { %2656 = vmatpush3.bf16.msra.mxu0 %v2831_v59 }
 0x1a4   :  { %2678 = vmatpush3.bf16.msra.mxu1 %v2831_v59  ;;  %2657 = vmatprep.subr.bf16.mxu0 %v2832_v10 }
 0x1a5   :  { %2679 = vmatprep.subr.bf16.mxu1 %v2832_v10 }
 0x1a7   :  { %2658 = vmatpush3.bf16.msra.mxu0 %v2833_v11 }
 0x1a8   :  { %2680 = vmatpush3.bf16.msra.mxu1 %v2833_v11  ;;  %2659 = vmatprep.subr.bf16.mxu0 %v2834_v14 }
 0x1a9   :  { %2681 = vmatprep.subr.bf16.mxu1 %v2834_v14 }
 0x1ab   :  { %2660 = vmatpush3.bf16.msra.mxu0 %v2835_v15 }
 0x1ac   :  { %2682 = vmatpush3.bf16.msra.mxu1 %v2835_v15  ;;  %2661 = vmatprep.subr.bf16.mxu0 %v2836_v16 }
 0x1ad   :  { %2683 = vmatprep.subr.bf16.mxu1 %v2836_v16 }
 0x1af   :  { %2662 = vmatpush3.bf16.msra.mxu0 %v2837_v17 }
 0x1b0   :  { %2684 = vmatpush3.bf16.msra.mxu1 %v2837_v17  ;;  %2663 = vmatprep.subr.bf16.mxu0 %v2838_v18 }
 0x1b1   :  { %2685 = vmatprep.subr.bf16.mxu1 %v2838_v18 }
 0x1b3   :  { %2664 = vmatpush3.bf16.msra.mxu0 %v2839_v19 }
 0x1b4   :  { %2686 = vmatpush3.bf16.msra.mxu1 %v2839_v19  ;;  %2665 = vmatprep.subr.bf16.mxu0 %v2840_v20 }
 0x1b5   :  { %2687 = vmatprep.subr.bf16.mxu1 %v2840_v20 }
 0x1b7   :  { %2666 = vmatpush3.bf16.msra.mxu0 %v2841_v21 }
 0x1b8   :  { %2688 = vmatpush3.bf16.msra.mxu1 %v2841_v21 }
 0x1ba   :  { %v2403_v25 = vpop.f32.mrf.mxu0  ;;  %v2425_v26 = vpop.f32.mrf.mxu1  ;;  %1899 = vmatmul.mubr.bf16.vlgmr.msra.gmra.mxu0 %v1766_v22 }
 0x1bb   :  { %1944 = vmatmul.mubr.bf16.vlgmr.msra.gmra.mxu1 %v1907_v23 }
 0x1bc   :  { %v2404_v27 = vpop.f32.mrf.mxu0  ;;  %v2426_v28 = vpop.f32.mrf.mxu1 }
 0x1bd   :  { %v2405_v31 = vadd.f32 %v2404_v27, %v2403_v25  ;;  %v2427_v32 = vadd.f32 %v2426_v28, %v2425_v26 }
 0x1be   :  { %v2406_v33 = vpop.f32.mrf.mxu0  ;;  %v2428_v34 = vpop.f32.mrf.mxu1 }
 0x1bf   :  { %v584_v35 = vadd.f32 %v2405_v31, %v365_v29  ;;  %v633_v12 = vadd.f32 %v2427_v32, %v406_v30  ;;  %v1953_v29 = vlaneseq }
 0x1c0   :  { %v2407_v36 = vpop.f32.mrf.mxu0  ;;  %v2429_v13 = vpop.f32.mrf.mxu1 }
 0x1c1   :  { %v1954_v33 = vshrl.u32 %v1953_v29, 7 }
 0x1da   :  { %v2447_v37 = vpop.f32.mrf.mxu0 }
 0x1db   :  { %v2469_v38 = vpop.f32.mrf.mxu1 }
 0x1dc   :  { %v2448_v39 = vpop.f32.mrf.mxu0 }
 0x1dd   :  { %v2449_v40 = vadd.f32 %v2448_v39, %v2447_v37  ;;  %v2470_v41 = vpop.f32.mrf.mxu1 }
 0x1de   :  { %v2471_v42 = vadd.f32 %v2470_v41, %v2469_v38  ;;  %v2450_v54 = vpop.f32.mrf.mxu0 }
 0x1df   :  { %v809_v55 = vadd.f32 %v2449_v40, %v584_v35  ;;  %v2472_v43 = vpop.f32.mrf.mxu1  ;;  %v1955_v40 = vsub.s32 0, %v1954_v33 }
 0x1e0   :  { %v856_v44 = vadd.f32 %v2471_v42, %v633_v12  ;;  %v2451_v45 = vpop.f32.mrf.mxu0 }
 0x1e1   :  { %v2473_v46 = vpop.f32.mrf.mxu1 }
 0x1fa   :  { %v2491_v47 = vpop.f32.mrf.mxu0 }
 0x1fb   :  { %v2513_v48 = vpop.f32.mrf.mxu1 }
 0x1fc   :  { %v2492_v49 = vpop.f32.mrf.mxu0 }
 0x1fd   :  { %v2493_v50 = vadd.f32 %v2492_v49, %v2491_v47  ;;  %v2514_v52 = vpop.f32.mrf.mxu1 }
 0x1fe   :  { %v2515_v53 = vadd.f32 %v2514_v52, %v2513_v48  ;;  %v2494_v56 = vpop.f32.mrf.mxu0 }
 0x1ff   :  { %v1030_v60 = vadd.f32 %v2493_v50, %v809_v55  ;;  %v2516_v61 = vpop.f32.mrf.mxu1 }
 0x200   :  { %v1075_v62 = vadd.f32 %v2515_v53, %v856_v44  ;;  %v2495_v63 = vpop.f32.mrf.mxu0 }
 0x201   :  { %v2517_v0 = vpop.f32.mrf.mxu1 }
 0x21a   :  { %v2535_v1 = vpop.f32.mrf.mxu0 }
 0x21b   :  { %v2557_v2 = vpop.f32.mrf.mxu1 }
 0x21c   :  { %v2536_v51 = vpop.f32.mrf.mxu0 }
 0x21d   :  { %v2537_v57 = vadd.f32 %v2536_v51, %v2535_v1  ;;  %v2558_v3 = vpop.f32.mrf.mxu1 }
 0x21e   :  { %v2559_v4 = vadd.f32 %v2558_v3, %v2557_v2  ;;  %v2538_v5 = vpop.f32.mrf.mxu0 }
 0x21f   :  { %v1249_v6 = vadd.f32 %v2537_v57, %v1030_v60  ;;  %v2560_v58 = vpop.f32.mrf.mxu1 }
 0x220   :  { %v1294_v7 = vadd.f32 %v2559_v4, %v1075_v62  ;;  %v2539_v59 = vpop.f32.mrf.mxu0 }
 0x221   :  { %v2561_v8 = vpop.f32.mrf.mxu1 }
 0x23a   :  { %v2579_v9 = vpop.f32.mrf.mxu0 }
 0x23b   :  { %v2601_v10 = vpop.f32.mrf.mxu1 }
 0x23c   :  { %v2580_v11 = vpop.f32.mrf.mxu0 }
 0x23d   :  { %v2581_v14 = vadd.f32 %v2580_v11, %v2579_v9  ;;  %v2602_v15 = vpop.f32.mrf.mxu1 }
 0x23e   :  { %v2582_v16 = vpop.f32.mrf.mxu0  ;;  %v2603_v30 = vadd.f32 %v2602_v15, %v2601_v10 }
 0x23f   :  { %v1468_v17 = vadd.f32 %v2581_v14, %v1249_v6  ;;  %v2604_v18 = vpop.f32.mrf.mxu1 }
 0x240   :  { %v2583_v19 = vpop.f32.mrf.mxu0  ;;  %v1513_v35 = vadd.f32 %v2603_v30, %v1294_v7 }
 0x241   :  { %v2605_v20 = vpop.f32.mrf.mxu1 }
 0x25a   :  { %v2623_v21 = vpop.f32.mrf.mxu0 }
 0x25b   :  { %v2645_v22 = vpop.f32.mrf.mxu1 }
 0x25c   :  { %v2624_v23 = vpop.f32.mrf.mxu0 }
 0x25d   :  { %v2646_v24 = vpop.f32.mrf.mxu1  ;;  %v2625_v12 = vadd.f32 %v2624_v23, %v2623_v21 }
 0x25e   :  { %v2626_v25 = vpop.f32.mrf.mxu0  ;;  %v2647_v31 = vadd.f32 %v2646_v24, %v2645_v22 }
 0x25f   :  { %v2648_v26 = vpop.f32.mrf.mxu1  ;;  %v1687_v54 = vadd.f32 %v2625_v12, %v1468_v17 }
 0x260   :  { %v2627_v27 = vpop.f32.mrf.mxu0  ;;  %v1732_v37 = vadd.f32 %v2647_v31, %v1513_v35 }
 0x261   :  { %v2649_v28 = vpop.f32.mrf.mxu1 }
 0x27a   :  { %v2667_v32 = vpop.f32.mrf.mxu0 }
 0x27b   :  { %v2689_v34 = vpop.f32.mrf.mxu1 }
 0x27c   :  { %v2668_v36 = vpop.f32.mrf.mxu0 }
 0x27d   :  { %v2690_v13 = vpop.f32.mrf.mxu1  ;;  %v2669_v38 = vadd.f32 %v2668_v36, %v2667_v32 }
 0x27e   :  { %v2691_v39 = vadd.f32 %v2690_v13, %v2689_v34  ;;  %v2670_v41 = vpop.f32.mrf.mxu0 }
 0x27f   :  { %v2692_v42 = vpop.f32.mrf.mxu1  ;;  %v1906_v45 = vadd.f32 %v2669_v38, %v1687_v54 }
 0x280   :  { %v1951_v55 = vadd.f32 %v2691_v39, %v1732_v37  ;;  %v2671_v43 = vpop.f32.mrf.mxu0 }
 0x281   :  { %v2693_v44 = vpop.f32.mrf.mxu1 }
 0x282   :  { %v1956_v46 = vrot.slane %v1951_v55, %v1955_v40 }
 0x284   :  { %v1959_v47 = vsel %vm1958_vm2, %v1906_v45, %v1956_v46 }
 0x285   :  { %1960 = vst [vmem:[#allocation2] sm:$0x3] %v1959_v47 }
 0x286   :  { %2853 = shalt.err (!%p2850_p4)
}
 0x287   :  { %1970 = dma.vmem_to_hbm [thread:$0]  %s1968_s4, 32, %s3379_s5, [#allocation3]  }
 0x288   :  { %2862 = dma.done.wait [#allocation3], 32  }
 0x289   :  { %2863 = vsyncadd [#allocation3], 4294967264 }
 0x28a   :  { %1974 = vsyncpa [#allocation3], 1 }

</bundles_post_ra>
